<compile_context>
chip_gen: v7x
topology: tpu7x:2x2x1
jax: 0.10.0
libtpu: 0.0.40
codegen_flags: <defaults>
</compile_context>

<pallas_src>
import math
import functools

import jax
import jax.numpy as jnp
from jax.experimental import pallas as pl
from jax.experimental.pallas import tpu as pltpu


def _round_up(x, m):
    return (x + m - 1) // m * m


def _sigmoid(z):
    # Mathematically identical to 1/(1+exp(-z)); single EUP transcendental.
    return 0.5 * jnp.tanh(0.5 * z) + 0.5


def _two_layer_kernel(x_ref, w1_ref, b1_ref, w2_ref, b2_ref, o_ref):
    # x_ref: (nX, tm) lane-dense batch tile in VMEM.
    # w1_ref (nH,nX), b1_ref (nH,), w2_ref (nY,nH), b2_ref (nY,): SMEM scalars.
    # o_ref: (nY, tm) lane-dense output tile.
    nX = x_ref.shape[0]
    nH = w1_ref.shape[0]
    nY = o_ref.shape[0]

    # Keep all math explicitly in f32 regardless of storage dtype.
    x = x_ref[...].astype(jnp.float32)

    # Layer 1: nH broadcast-FMA rows on the VPU (static Python unroll).
    hidden = []
    for j in range(nH):
        z = x[0:1, :] * w1_ref[j, 0]
        for i in range(1, nX):
            z = z + x[i:i + 1, :] * w1_ref[j, i]
        hidden.append(_sigmoid(z + b1_ref[j]))          # (1, tm), stays on-chip

    # Layer 2: nY rows, each a weighted sum of the hidden rows.
    out_rows = []
    for k in range(nY):
        y = hidden[0] * w2_ref[k, 0]
        for j in range(1, nH):
            y = y + hidden[j] * w2_ref[k, j]
        out_rows.append(_sigmoid(y + b2_ref[k]))

    o_ref[...] = jnp.concatenate(out_rows, axis=0).astype(o_ref.dtype)


@functools.partial(jax.jit, static_argnames=("block_m",))
def two_layers_net_forward(x_t, w1, b1, w2, b2, *, block_m=32768):
    """Fused TwoLayersNet forward in transposed (lane-dense) layout.

    x_t: (nX, B) f32  -- input, batch on the lane axis (transposed ONCE at init)
    w1:  (nH, nX) f32 -- fc1 weight, original PyTorch layout
    b1:  (nH,)    f32
    w2:  (nY, nH) f32 -- fc2 weight, original PyTorch layout
    b2:  (nY,)    f32
    returns y_t: (nY, B)
    """
    nX, B = x_t.shape
    nH, nX2 = w1.shape
    nY, nH2 = w2.shape
    assert nX == nX2 and nH == nH2 and b1.shape == (nH,) and b2.shape == (nY,)

    # Lane tile over the batch: either the full extent (small B) or a multiple
    # of 128 lanes.  No wrapper-side padding -- Pallas masks the ragged tail.
    if B <= block_m:
        tm = B
    else:
        tm = _round_up(min(block_m, B), 128)
    grid = (pl.cdiv(B, tm),)

    flops = B * (2 * nX * nH + nH + 2 * nH * nY + nY)
    bytes_accessed = 4 * (B * nX + B * nY) + 4 * (nH * nX + nH + nY * nH + nY)

    smem_spec = pl.BlockSpec(memory_space=pltpu.MemorySpace.SMEM)

    return pl.pallas_call(
        _two_layer_kernel,
        out_shape=jax.ShapeDtypeStruct((nY, B), x_t.dtype),
        grid_spec=pl.GridSpec(
            grid=grid,
            in_specs=[
                pl.BlockSpec((nX, tm), lambda i: (0, i)),   # x tile, lane-dense
                smem_spec,                                   # W1 scalars (SMEM)
                smem_spec,                                   # b1 scalars (SMEM)
                smem_spec,                                   # W2 scalars (SMEM)
                smem_spec,                                   # b2 scalars (SMEM)
            ],
            out_specs=pl.BlockSpec((nY, tm), lambda i: (0, i)),
        ),
        compiler_params=pltpu.CompilerParams(
            dimension_semantics=("parallel",),      # batch tiles shard across TCs
            vmem_limit_bytes=32 * 1024 * 1024,      # tiles are tiny; safe everywhere
        ),
        cost_estimate=pl.CostEstimate(
            flops=flops,
            transcendentals=B * (nH + nY),
            bytes_accessed=bytes_accessed,
        ),
    )(x_t, w1, b1, w2, b2)


def init_linear_params(key, in_f, out_f):
    # Matches PyTorch default nn.Linear reset_parameters:
    # weight ~ U(-1/sqrt(fan_in), 1/sqrt(fan_in)), bias likewise.
    kw, kb = jax.random.split(key)
    bound = 1.0 / math.sqrt(in_f)
    weight = jax.random.uniform(kw, (out_f, in_f), jnp.float32,
                                minval=-bound, maxval=bound)
    bias = jax.random.uniform(kb, (out_f,), jnp.float32,
                              minval=-bound, maxval=bound)
    return weight, bias


if __name__ == "__main__":
    nX, nH, nY = 2, 5, 1     # matches the PyTorch spec
    B = 8

    key = jax.random.PRNGKey(0)
    kx, k1, k2 = jax.random.split(key, 3)

    x = jax.random.normal(kx, (B, nX), jnp.float32)
    w1, b1 = init_linear_params(k1, nX, nH)      # PyTorch layout (nH, nX), (nH,)
    w2, b2 = init_linear_params(k2, nH, nY)      # PyTorch layout (nY, nH), (nY,)

    # One-time layout change at init (NOT per forward call): batch on lanes.
    x_t = jnp.asarray(x.T)                       # (nX, B)

    y_t = two_layers_net_forward(x_t, w1, b1, w2, b2)
    jax.block_until_ready(y_t)
    y = y_t.T                                    # back to (B, nY) for comparison

    # Pure-JAX reference with the original PyTorch semantics.
    h_ref = 1.0 / (1.0 + jnp.exp(-(x @ w1.T + b1)))
    y_ref = 1.0 / (1.0 + jnp.exp(-(h_ref @ w2.T + b2)))

    assert y.shape == (B, nY)
    assert jnp.allclose(y, y_ref, atol=1e-5, rtol=1e-5)

    print("KERNEL_OK")
</pallas_src>

<mosaic_0001>
module attributes {stable_mosaic.version = 11 : i64} {
  func.func @_two_layer_kernel(%arg0: i32, %arg1: memref<2x8xf32, #tpu.memory_space<vmem>>, %arg2: memref<5x2xf32, #tpu.memory_space<smem>>, %arg3: memref<5xf32, #tpu.memory_space<smem>>, %arg4: memref<1x5xf32, #tpu.memory_space<smem>>, %arg5: memref<1xf32, #tpu.memory_space<smem>>, %arg6: memref<1x8xf32, #tpu.memory_space<vmem>>) attributes {dimension_semantics = [#tpu.dimension_semantics<parallel>], iteration_bounds = array<i64: 1>, scalar_prefetch = 0 : i64, scratch_operands = 0 : i64, tpu.core_type = #tpu.core_type<tc>, window_params = [{transform_indices = @transform_0, window_bounds = array<i64: 2, 8>}, {transform_indices = @transform_1, window_bounds = array<i64: 5, 2>}, {transform_indices = @transform_2, window_bounds = array<i64: 5>}, {transform_indices = @transform_3, window_bounds = array<i64: 1, 5>}, {transform_indices = @transform_4, window_bounds = array<i64: 1>}, {transform_indices = @transform_5, window_bounds = array<i64: 1, 8>}]} {
    %c0 = arith.constant 0 : index
    %c0_0 = arith.constant 0 : index
    %0 = vector.load %arg1[%c0, %c0_0] : memref<2x8xf32, #tpu.memory_space<vmem>>, vector<2x8xf32>
    %1 = vector.extract_strided_slice %0 {offsets = [0, 0], sizes = [1, 8], strides = [1, 1]} : vector<2x8xf32> to vector<1x8xf32>
    %c0_1 = arith.constant 0 : index
    %c0_2 = arith.constant 0 : index
    %2 = memref.load %arg2[%c0_1, %c0_2] : memref<5x2xf32, #tpu.memory_space<smem>>
    %3 = vector.broadcast %2 : f32 to vector<1x8xf32>
    %4 = arith.mulf %1, %3 : vector<1x8xf32>
    %5 = vector.extract_strided_slice %0 {offsets = [1, 0], sizes = [1, 8], strides = [1, 1]} : vector<2x8xf32> to vector<1x8xf32>
    %c0_3 = arith.constant 0 : index
    %c1 = arith.constant 1 : index
    %6 = memref.load %arg2[%c0_3, %c1] : memref<5x2xf32, #tpu.memory_space<smem>>
    %7 = vector.broadcast %6 : f32 to vector<1x8xf32>
    %8 = arith.mulf %5, %7 : vector<1x8xf32>
    %9 = arith.addf %4, %8 : vector<1x8xf32>
    %c0_4 = arith.constant 0 : index
    %10 = memref.load %arg3[%c0_4] : memref<5xf32, #tpu.memory_space<smem>>
    %11 = vector.broadcast %10 : f32 to vector<1x8xf32>
    %12 = arith.addf %9, %11 : vector<1x8xf32>
    %cst = arith.constant 5.000000e-01 : f32
    %13 = vector.broadcast %cst : f32 to vector<1x8xf32>
    %14 = arith.mulf %13, %12 : vector<1x8xf32>
    %15 = math.tanh %14 : vector<1x8xf32>
    %cst_5 = arith.constant 5.000000e-01 : f32
    %16 = vector.broadcast %cst_5 : f32 to vector<1x8xf32>
    %17 = arith.mulf %16, %15 : vector<1x8xf32>
    %cst_6 = arith.constant 5.000000e-01 : f32
    %18 = vector.broadcast %cst_6 : f32 to vector<1x8xf32>
    %19 = arith.addf %17, %18 : vector<1x8xf32>
    %20 = vector.extract_strided_slice %0 {offsets = [0, 0], sizes = [1, 8], strides = [1, 1]} : vector<2x8xf32> to vector<1x8xf32>
    %c1_7 = arith.constant 1 : index
    %c0_8 = arith.constant 0 : index
    %21 = memref.load %arg2[%c1_7, %c0_8] : memref<5x2xf32, #tpu.memory_space<smem>>
    %22 = vector.broadcast %21 : f32 to vector<1x8xf32>
    %23 = arith.mulf %20, %22 : vector<1x8xf32>
    %24 = vector.extract_strided_slice %0 {offsets = [1, 0], sizes = [1, 8], strides = [1, 1]} : vector<2x8xf32> to vector<1x8xf32>
    %c1_9 = arith.constant 1 : index
    %c1_10 = arith.constant 1 : index
    %25 = memref.load %arg2[%c1_9, %c1_10] : memref<5x2xf32, #tpu.memory_space<smem>>
    %26 = vector.broadcast %25 : f32 to vector<1x8xf32>
    %27 = arith.mulf %24, %26 : vector<1x8xf32>
    %28 = arith.addf %23, %27 : vector<1x8xf32>
    %c1_11 = arith.constant 1 : index
    %29 = memref.load %arg3[%c1_11] : memref<5xf32, #tpu.memory_space<smem>>
    %30 = vector.broadcast %29 : f32 to vector<1x8xf32>
    %31 = arith.addf %28, %30 : vector<1x8xf32>
    %cst_12 = arith.constant 5.000000e-01 : f32
    %32 = vector.broadcast %cst_12 : f32 to vector<1x8xf32>
    %33 = arith.mulf %32, %31 : vector<1x8xf32>
    %34 = math.tanh %33 : vector<1x8xf32>
    %cst_13 = arith.constant 5.000000e-01 : f32
    %35 = vector.broadcast %cst_13 : f32 to vector<1x8xf32>
    %36 = arith.mulf %35, %34 : vector<1x8xf32>
    %cst_14 = arith.constant 5.000000e-01 : f32
    %37 = vector.broadcast %cst_14 : f32 to vector<1x8xf32>
    %38 = arith.addf %36, %37 : vector<1x8xf32>
    %39 = vector.extract_strided_slice %0 {offsets = [0, 0], sizes = [1, 8], strides = [1, 1]} : vector<2x8xf32> to vector<1x8xf32>
    %c2 = arith.constant 2 : index
    %c0_15 = arith.constant 0 : index
    %40 = memref.load %arg2[%c2, %c0_15] : memref<5x2xf32, #tpu.memory_space<smem>>
    %41 = vector.broadcast %40 : f32 to vector<1x8xf32>
    %42 = arith.mulf %39, %41 : vector<1x8xf32>
    %43 = vector.extract_strided_slice %0 {offsets = [1, 0], sizes = [1, 8], strides = [1, 1]} : vector<2x8xf32> to vector<1x8xf32>
    %c2_16 = arith.constant 2 : index
    %c1_17 = arith.constant 1 : index
    %44 = memref.load %arg2[%c2_16, %c1_17] : memref<5x2xf32, #tpu.memory_space<smem>>
    %45 = vector.broadcast %44 : f32 to vector<1x8xf32>
    %46 = arith.mulf %43, %45 : vector<1x8xf32>
    %47 = arith.addf %42, %46 : vector<1x8xf32>
    %c2_18 = arith.constant 2 : index
    %48 = memref.load %arg3[%c2_18] : memref<5xf32, #tpu.memory_space<smem>>
    %49 = vector.broadcast %48 : f32 to vector<1x8xf32>
    %50 = arith.addf %47, %49 : vector<1x8xf32>
    %cst_19 = arith.constant 5.000000e-01 : f32
    %51 = vector.broadcast %cst_19 : f32 to vector<1x8xf32>
    %52 = arith.mulf %51, %50 : vector<1x8xf32>
    %53 = math.tanh %52 : vector<1x8xf32>
    %cst_20 = arith.constant 5.000000e-01 : f32
    %54 = vector.broadcast %cst_20 : f32 to vector<1x8xf32>
    %55 = arith.mulf %54, %53 : vector<1x8xf32>
    %cst_21 = arith.constant 5.000000e-01 : f32
    %56 = vector.broadcast %cst_21 : f32 to vector<1x8xf32>
    %57 = arith.addf %55, %56 : vector<1x8xf32>
    %58 = vector.extract_strided_slice %0 {offsets = [0, 0], sizes = [1, 8], strides = [1, 1]} : vector<2x8xf32> to vector<1x8xf32>
    %c3 = arith.constant 3 : index
    %c0_22 = arith.constant 0 : index
    %59 = memref.load %arg2[%c3, %c0_22] : memref<5x2xf32, #tpu.memory_space<smem>>
    %60 = vector.broadcast %59 : f32 to vector<1x8xf32>
    %61 = arith.mulf %58, %60 : vector<1x8xf32>
    %62 = vector.extract_strided_slice %0 {offsets = [1, 0], sizes = [1, 8], strides = [1, 1]} : vector<2x8xf32> to vector<1x8xf32>
    %c3_23 = arith.constant 3 : index
    %c1_24 = arith.constant 1 : index
    %63 = memref.load %arg2[%c3_23, %c1_24] : memref<5x2xf32, #tpu.memory_space<smem>>
    %64 = vector.broadcast %63 : f32 to vector<1x8xf32>
    %65 = arith.mulf %62, %64 : vector<1x8xf32>
    %66 = arith.addf %61, %65 : vector<1x8xf32>
    %c3_25 = arith.constant 3 : index
    %67 = memref.load %arg3[%c3_25] : memref<5xf32, #tpu.memory_space<smem>>
    %68 = vector.broadcast %67 : f32 to vector<1x8xf32>
    %69 = arith.addf %66, %68 : vector<1x8xf32>
    %cst_26 = arith.constant 5.000000e-01 : f32
    %70 = vector.broadcast %cst_26 : f32 to vector<1x8xf32>
    %71 = arith.mulf %70, %69 : vector<1x8xf32>
    %72 = math.tanh %71 : vector<1x8xf32>
    %cst_27 = arith.constant 5.000000e-01 : f32
    %73 = vector.broadcast %cst_27 : f32 to vector<1x8xf32>
    %74 = arith.mulf %73, %72 : vector<1x8xf32>
    %cst_28 = arith.constant 5.000000e-01 : f32
    %75 = vector.broadcast %cst_28 : f32 to vector<1x8xf32>
    %76 = arith.addf %74, %75 : vector<1x8xf32>
    %77 = vector.extract_strided_slice %0 {offsets = [0, 0], sizes = [1, 8], strides = [1, 1]} : vector<2x8xf32> to vector<1x8xf32>
    %c4 = arith.constant 4 : index
    %c0_29 = arith.constant 0 : index
    %78 = memref.load %arg2[%c4, %c0_29] : memref<5x2xf32, #tpu.memory_space<smem>>
    %79 = vector.broadcast %78 : f32 to vector<1x8xf32>
    %80 = arith.mulf %77, %79 : vector<1x8xf32>
    %81 = vector.extract_strided_slice %0 {offsets = [1, 0], sizes = [1, 8], strides = [1, 1]} : vector<2x8xf32> to vector<1x8xf32>
    %c4_30 = arith.constant 4 : index
    %c1_31 = arith.constant 1 : index
    %82 = memref.load %arg2[%c4_30, %c1_31] : memref<5x2xf32, #tpu.memory_space<smem>>
    %83 = vector.broadcast %82 : f32 to vector<1x8xf32>
    %84 = arith.mulf %81, %83 : vector<1x8xf32>
    %85 = arith.addf %80, %84 : vector<1x8xf32>
    %c4_32 = arith.constant 4 : index
    %86 = memref.load %arg3[%c4_32] : memref<5xf32, #tpu.memory_space<smem>>
    %87 = vector.broadcast %86 : f32 to vector<1x8xf32>
    %88 = arith.addf %85, %87 : vector<1x8xf32>
    %cst_33 = arith.constant 5.000000e-01 : f32
    %89 = vector.broadcast %cst_33 : f32 to vector<1x8xf32>
    %90 = arith.mulf %89, %88 : vector<1x8xf32>
    %91 = math.tanh %90 : vector<1x8xf32>
    %cst_34 = arith.constant 5.000000e-01 : f32
    %92 = vector.broadcast %cst_34 : f32 to vector<1x8xf32>
    %93 = arith.mulf %92, %91 : vector<1x8xf32>
    %cst_35 = arith.constant 5.000000e-01 : f32
    %94 = vector.broadcast %cst_35 : f32 to vector<1x8xf32>
    %95 = arith.addf %93, %94 : vector<1x8xf32>
    %c0_36 = arith.constant 0 : index
    %c0_37 = arith.constant 0 : index
    %96 = memref.load %arg4[%c0_36, %c0_37] : memref<1x5xf32, #tpu.memory_space<smem>>
    %97 = vector.broadcast %96 : f32 to vector<1x8xf32>
    %98 = arith.mulf %19, %97 : vector<1x8xf32>
    %c0_38 = arith.constant 0 : index
    %c1_39 = arith.constant 1 : index
    %99 = memref.load %arg4[%c0_38, %c1_39] : memref<1x5xf32, #tpu.memory_space<smem>>
    %100 = vector.broadcast %99 : f32 to vector<1x8xf32>
    %101 = arith.mulf %38, %100 : vector<1x8xf32>
    %102 = arith.addf %98, %101 : vector<1x8xf32>
    %c0_40 = arith.constant 0 : index
    %c2_41 = arith.constant 2 : index
    %103 = memref.load %arg4[%c0_40, %c2_41] : memref<1x5xf32, #tpu.memory_space<smem>>
    %104 = vector.broadcast %103 : f32 to vector<1x8xf32>
    %105 = arith.mulf %57, %104 : vector<1x8xf32>
    %106 = arith.addf %102, %105 : vector<1x8xf32>
    %c0_42 = arith.constant 0 : index
    %c3_43 = arith.constant 3 : index
    %107 = memref.load %arg4[%c0_42, %c3_43] : memref<1x5xf32, #tpu.memory_space<smem>>
    %108 = vector.broadcast %107 : f32 to vector<1x8xf32>
    %109 = arith.mulf %76, %108 : vector<1x8xf32>
    %110 = arith.addf %106, %109 : vector<1x8xf32>
    %c0_44 = arith.constant 0 : index
    %c4_45 = arith.constant 4 : index
    %111 = memref.load %arg4[%c0_44, %c4_45] : memref<1x5xf32, #tpu.memory_space<smem>>
    %112 = vector.broadcast %111 : f32 to vector<1x8xf32>
    %113 = arith.mulf %95, %112 : vector<1x8xf32>
    %114 = arith.addf %110, %113 : vector<1x8xf32>
    %c0_46 = arith.constant 0 : index
    %115 = memref.load %arg5[%c0_46] : memref<1xf32, #tpu.memory_space<smem>>
    %116 = vector.broadcast %115 : f32 to vector<1x8xf32>
    %117 = arith.addf %114, %116 : vector<1x8xf32>
    %cst_47 = arith.constant 5.000000e-01 : f32
    %118 = vector.broadcast %cst_47 : f32 to vector<1x8xf32>
    %119 = arith.mulf %118, %117 : vector<1x8xf32>
    %120 = math.tanh %119 : vector<1x8xf32>
    %cst_48 = arith.constant 5.000000e-01 : f32
    %121 = vector.broadcast %cst_48 : f32 to vector<1x8xf32>
    %122 = arith.mulf %121, %120 : vector<1x8xf32>
    %cst_49 = arith.constant 5.000000e-01 : f32
    %123 = vector.broadcast %cst_49 : f32 to vector<1x8xf32>
    %124 = arith.addf %122, %123 : vector<1x8xf32>
    %c0_50 = arith.constant 0 : index
    %c0_51 = arith.constant 0 : index
    %125 = vector.load %arg6[%c0_50, %c0_51] : memref<1x8xf32, #tpu.memory_space<vmem>>, vector<1x8xf32>
    tpu.vector_store %arg6[%c0_50, %c0_51], %124 {strides = array<i32>} : memref<1x8xf32, #tpu.memory_space<vmem>>, vector<1x8xf32>,
    return
  }
  func.func @transform_0(%arg0: i32) -> (i32, i32) {
    %c0_i32 = arith.constant 0 : i32
    %c0_i32_0 = arith.constant 0 : i32
    return %c0_i32, %arg0 : i32, i32
  }
  func.func @transform_1(%arg0: i32) -> (i32, i32) {
    %c0_i32 = arith.constant 0 : i32
    %c0_i32_0 = arith.constant 0 : i32
    %c0_i32_1 = arith.constant 0 : i32
    return %c0_i32, %c0_i32_0 : i32, i32
  }
  func.func @transform_2(%arg0: i32) -> i32 {
    %c0_i32 = arith.constant 0 : i32
    %c0_i32_0 = arith.constant 0 : i32
    return %c0_i32 : i32
  }
  func.func @transform_3(%arg0: i32) -> (i32, i32) {
    %c0_i32 = arith.constant 0 : i32
    %c0_i32_0 = arith.constant 0 : i32
    %c0_i32_1 = arith.constant 0 : i32
    return %c0_i32, %c0_i32_0 : i32, i32
  }
  func.func @transform_4(%arg0: i32) -> i32 {
    %c0_i32 = arith.constant 0 : i32
    %c0_i32_0 = arith.constant 0 : i32
    return %c0_i32 : i32
  }
  func.func @transform_5(%arg0: i32) -> (i32, i32) {
    %c0_i32 = arith.constant 0 : i32
    %c0_i32_0 = arith.constant 0 : i32
    return %c0_i32, %arg0 : i32, i32
  }
}

</mosaic_0001>

<bundles_post_ra>
// kernel: two_layers_net_forward.1
= control target key start
LH: loop header
LB: loop body
LE: loop exit
PB: predicated region body
PF: predicated region fallthrough
CT: control target
= control target key end

     0   :  { %11 = vsyncpa [#allocation5], 0  ;;  %s367_s0 = inlined_call_operand.vmem [shape: f32[2,8], index: 0, kind: input, shape index: {}]   ;;  %s368_s1 = inlined_call_operand.vmem [shape: f32[5,2], index: 1, kind: input, shape index: {}]   ;;  %s369_s2 = inlined_call_operand.vmem [shape: f32[5], index: 2, kind: input, shape index: {}]   ;;  %s370_s3 = inlined_call_operand.vmem [shape: f32[1,5], index: 3, kind: input, shape index: {}]   ;;  %s371_s4 = inlined_call_operand.<no memory space> [shape: f32[1], index: 4, kind: input, shape index: {}]   ;;  %s372_s5 = inlined_call_operand.hbm [shape: f32[1,8], index: 5, kind: output, shape index: {}]  }
   0x1   :  { %12 = vsyncpa [#allocation7], 0  ;;  %s32_s20 = sshll.u32 %s369_s2, 4  ;;  %s33_s20 = int_to_ptr.vmem [resolvable:$true] %s32_s20 }
   0x2   :  { %13 = vsyncpa [#allocation4], 0  ;;  %s22_s23 = sshll.u32 %s368_s1, 4  ;;  %s221_s24 = scalar_lea.vmem %s33_s20, 16  ;;  %s23_s23 = int_to_ptr.vmem [resolvable:$true] %s22_s23 }
   0x3   :  { %p222_p0 = scmp.ne.s32.totalorder %s33_s20, %s221_s24  ;;  %p226_p1 = scmp.lt.s32.totalorder %s33_s20, %s33_s20 }
   0x4   :  { %p227_p2 = scmp.lt.s32.totalorder %s221_s24, %s221_s24 }
   0x6   :  { %p228_p3 = por %p227_p2, %p226_p1 }
   0x8   :  { %p229_p4 = pnand %p228_p3, %p222_p0 }
   0xa   :  { %232 = shalt.err (!%p229_p4)
}
   0xb   :  { %s285_s25 = smov [#allocation6]   ;;  %s233_s26 = scalar_lea.vmem %s23_s23, 128 }
   0xc   :  { %35 = dma.vmem_to_smem %s33_s20, 16, %s285_s25, [#allocation7]  }
   0xd   :  { %p234_p5 = scmp.ne.s32.totalorder %s23_s23, %s233_s26  ;;  %p238_p6 = scmp.lt.s32.totalorder %s23_s23, %s23_s23 }
   0xe   :  { %p239_p7 = scmp.lt.s32.totalorder %s233_s26, %s233_s26 }
  0x10   :  { %p240_p8 = por %p239_p7, %p238_p6 }
  0x12   :  { %p241_p9 = pnand %p240_p8, %p234_p5 }
  0x14   :  { %244 = shalt.err (!%p241_p9)
}
  0x15   :  { %s286_s2 = smov [#allocation3]   ;;  %s42_s28 = sshll.u32 %s370_s3, 4  ;;  %s43_s28 = int_to_ptr.vmem [resolvable:$true] %s42_s28 }
  0x16   :  { %25 = dma.vmem_to_smem %s23_s23, 128, %s286_s2, [#allocation5]  }
  0x17   :  { %s245_s29 = scalar_lea.vmem %s43_s28, 16  ;;  %p250_p11 = scmp.lt.s32.totalorder %s43_s28, %s43_s28 }
  0x18   :  { %p246_p10 = scmp.ne.s32.totalorder %s43_s28, %s245_s29  ;;  %p251_p12 = scmp.lt.s32.totalorder %s245_s29, %s245_s29 }
  0x1a   :  { %p252_p13 = por %p251_p12, %p250_p11 }
  0x1c   :  { %p253_p0 = pnand %p252_p13, %p246_p10 }
  0x1e   :  { %256 = shalt.err (!%p253_p0)
}
  0x1f   :  { %s287_s30 = smov [#allocation8]  }
  0x20   :  { %45 = dma.vmem_to_smem %s43_s28, 16, %s287_s30, [#allocation7]  }
  0x21   :  { %279 = dma.done.wait [#allocation5], 128  }
  0x22   :  { %280 = vsyncadd [#allocation5], 4294967168 }
  0x23   :  { %281 = dma.done.wait [#allocation7], 32  }
  0x24   :  { %282 = vsyncadd [#allocation7], 4294967264 }
  0x25   :  { %57 = sfence }
  0x26   :  { %s59_s6 = sld [smem:[#allocation3]]  ;;  %s188_s7 = sld [smem:[#allocation3 + $0x1]]  ;;  %v58_v0 = vld [vmem:[%s367_s0] sm:$0x3]  ;;  %vm170_vm0 = vcmask 57344  }
  0x27   :  { %s328_s8 = sld [smem:[#allocation6]]  ;;  %s190_s9 = sld [smem:[#allocation3 + $0x81]] }
  0x28   :  { %s189_s3 = sld [smem:[#allocation3 + $0x80]]  ;;  %s330_s10 = sld [smem:[#allocation6 + $0x1]] }
  0x29   :  { %s192_s11 = sld [smem:[#allocation3 + $0x100]]  ;;  %s193_s12 = sld [smem:[#allocation3 + $0x101]] }
  0x2a   :  { %s195_s15 = sld [smem:[#allocation3 + $0x180]]  ;;  %s335_s16 = sld [smem:[#allocation6 + $0x2]] }
  0x2b   :  { %s196_s17 = sld [smem:[#allocation3 + $0x181]]  ;;  %s337_s18 = sld [smem:[#allocation3 + $0x200]] }
  0x2c   :  { %v60_v1 = vstv %s59_s6  ;;  %v63_v2 = vstv %s188_s7  ;;  %s339_s19 = sld [smem:[#allocation3 + $0x201]]  ;;  %s341_s20 = sld [smem:[#allocation6 + $0x3]] }
  0x2d   :  { %v61_v3 = vmul.f32 %v60_v1, %v58_v0  ;;  %v64_v4 = vmul.f32 %v63_v2, %v58_v0  ;;  %v80_v7 = vstv %s190_s9  ;;  %s343_s0 = sld [smem:[#allocation6 + $0x4]]  ;;  %v70_v12 = vstv %s328_s8  ;;  %s144_s21 = sld [smem:[#allocation8]] }
  0x2e   :  { %v77_v5 = vstv %s189_s3  ;;  %v81_v9 = vmul.f32 %v80_v7, %v58_v0  ;;  %v87_v18 = vstv %s330_s10  ;;  %s201_s22 = sld [smem:[#allocation8 + $0x1]]  ;;  %s202_s23 = sld [smem:[#allocation8 + $0x2]] }
  0x2f   :  { %v78_v6 = vmul.f32 %v77_v5, %v58_v0  ;;  %v66_v8 = vrot.slane %v64_v4, 1  ;;  %v94_v10 = vstv %s192_s11  ;;  %v97_v11 = vstv %s193_s12  ;;  %s203_s24 = sld [smem:[#allocation8 + $0x3]]  ;;  %s204_s25 = sld [smem:[#allocation8 + $0x4]] }
  0x30   :  { %v95_v13 = vmul.f32 %v94_v10, %v58_v0  ;;  %v98_v14 = vmul.f32 %v97_v11, %v58_v0  ;;  %v111_v15 = vstv %s195_s15  ;;  %v83_v17 = vrot.slane %v81_v9, 1  ;;  %s288_s1 = smov [#allocation9]  }
  0x31   :  { %v68_v16 = vadd.f32 %v66_v8, %v61_v3  ;;  %v114_v19 = vstv %s196_s17  ;;  %v112_v21 = vmul.f32 %v111_v15, %v58_v0  ;;  %v128_v23 = vstv %s337_s18  ;;  %s178_s27 = sshll.u32 %s288_s1, 4  ;;  %s179_s27 = int_to_ptr.vmem [resolvable:$true] %s178_s27 }
  0x32   :  { %v100_v20 = vrot.slane %v98_v14, 1  ;;  %v115_v22 = vmul.f32 %v114_v19, %v58_v0  ;;  %v85_v25 = vadd.f32 %v83_v17, %v78_v6  ;;  %v104_v26 = vstv %s335_s16  ;;  %s257_s28 = scalar_lea.vmem %s179_s27, 16  ;;  %s261_s29 = scalar_lea.vmem %s179_s27, 32 }
  0x33   :  { %v71_v24 = vadd.f32 %v70_v12, %v68_v16  ;;  %v131_v27 = vstv %s339_s19  ;;  %v129_v30 = vmul.f32 %v128_v23, %v58_v0  ;;  %v121_v34 = vstv %s341_s20  ;;  %p258_p1 = scmp.ne.s32.totalorder %s179_s27, %s257_s28  ;;  %p262_p2 = scmp.lt.s32.totalorder %s179_s27, %s179_s27 }
  0x34   :  { %v102_v28 = vadd.f32 %v100_v20, %v95_v13  ;;  %v117_v29 = vrot.slane %v115_v22, 1  ;;  %v132_v31 = vmul.f32 %v131_v27, %v58_v0  ;;  %v88_v33 = vadd.f32 %v87_v18, %v85_v25  ;;  %p263_p3 = scmp.lt.s32.totalorder %s261_s29, %s257_s28 }
  0x35   :  { %v72_v32 = vmul.f32 0.5, %v71_v24  ;;  %v138_v39 = vstv %s343_s0  ;;  %v145_v49 = vstv %s144_s21  ;;  %v148_v54 = vstv %s201_s22 }
  0x36   :  { %v105_v35 = vadd.f32 %v104_v26, %v102_v28  ;;  %v119_v36 = vadd.f32 %v117_v29, %v112_v21  ;;  %v134_v37 = vrot.slane %v132_v31, 1  ;;  %v89_v38 = vmul.f32 0.5, %v88_v33  ;;  %p264_p4 = por %p263_p3, %p262_p2 }
  0x37   :  { %209 = vtanh.f32 %v72_v32  ;;  %v152_v58 = vstv %s202_s23  ;;  %v156_v63 = vstv %s203_s24  ;;  %v160_v4 = vstv %s204_s25 }
  0x38   :  { %v106_v40 = vmul.f32 0.5, %v105_v35  ;;  %v122_v41 = vadd.f32 %v121_v34, %v119_v36  ;;  %v136_v42 = vadd.f32 %v134_v37, %v129_v30  ;;  %211 = vtanh.f32 %v89_v38  ;;  %p265_p5 = pnand %p264_p4, %p258_p1 }
  0x39   :  { %v164_v10 = vstv %s371_s4 }
  0x3a   :  { %213 = vtanh.f32 %v106_v40  ;;  %v123_v43 = vmul.f32 0.5, %v122_v41  ;;  %v139_v44 = vadd.f32 %v138_v39, %v136_v42 }
  0x3c   :  { %215 = vtanh.f32 %v123_v43  ;;  %v140_v45 = vmul.f32 0.5, %v139_v44 }
  0x3e   :  { %217 = vtanh.f32 %v140_v45 }
  0x41   :  { %v210_v46 = vpop.eup %209 }
  0x42   :  { %v74_v47 = vmul.f32 0.5, %v210_v46  ;;  %v212_v48 = vpop.eup %211 }
  0x43   :  { %v91_v52 = vmul.f32 0.5, %v212_v48 }
  0x44   :  { %v214_v50 = vpop.eup %213  ;;  %v75_v51 = vadd.f32 0.5, %v74_v47 }
  0x45   :  { %v108_v53 = vmul.f32 0.5, %v214_v50  ;;  %v92_v56 = vadd.f32 0.5, %v91_v52 }
  0x46   :  { %v216_v55 = vpop.eup %215  ;;  %v146_v57 = vmul.f32 %v145_v49, %v75_v51 }
  0x47   :  { %v109_v59 = vadd.f32 0.5, %v108_v53  ;;  %v125_v60 = vmul.f32 0.5, %v216_v55  ;;  %v149_v62 = vmul.f32 %v148_v54, %v92_v56 }
  0x48   :  { %v218_v61 = vpop.eup %217 }
  0x49   :  { %v126_v0 = vadd.f32 0.5, %v125_v60  ;;  %v142_v1 = vmul.f32 0.5, %v218_v61  ;;  %v153_v2 = vmul.f32 %v152_v58, %v109_v59  ;;  %v150_v3 = vadd.f32 %v149_v62, %v146_v57 }
  0x4b   :  { %v143_v5 = vadd.f32 0.5, %v142_v1  ;;  %v157_v6 = vmul.f32 %v156_v63, %v126_v0  ;;  %v154_v7 = vadd.f32 %v153_v2, %v150_v3 }
  0x4d   :  { %v161_v8 = vmul.f32 %v160_v4, %v143_v5  ;;  %v158_v9 = vadd.f32 %v157_v6, %v154_v7 }
  0x4f   :  { %v162_v11 = vadd.f32 %v161_v8, %v158_v9 }
  0x51   :  { %v165_v12 = vadd.f32 %v164_v10, %v162_v11 }
  0x53   :  { %v166_v13 = vmul.f32 0.5, %v165_v12 }
  0x55   :  { %219 = vtanh.f32 %v166_v13 }
  0x5f   :  { %v220_v14 = vpop.eup %219 }
  0x60   :  { %v168_v15 = vmul.f32 0.5, %v220_v14 }
  0x62   :  { %v169_v16 = vadd.f32 0.5, %v168_v15 }
  0x64   :  { %171 = vst.msk [vmem:[#allocation9] sm:$0x1] %vm170_vm0, %v169_v16 }
  0x65   :  { %268 = shalt.err (!%p265_p5)
}
  0x66   :  { %s269_s6 = scalar_lea.hbm %s372_s5, 16 }
  0x67   :  { %p270_p6 = scmp.ne.s32.totalorder %s372_s5, %s269_s6  ;;  %p273_p7 = scmp.lt.u32.totalorder %s269_s6, %s372_s5 }
  0x69   :  { %p275_p8 = pnand %p273_p7, %p270_p6 }
  0x6b   :  { %278 = shalt.err (!%p275_p8)
}
  0x6c   :  { %181 = dma.vmem_to_hbm [thread:$0]  %s179_s27, 16, %s372_s5, [#allocation4]  }
  0x6d   :  { %283 = dma.done.wait [#allocation4], 16  }
  0x6e   :  { %284 = vsyncadd [#allocation4], 4294967280 }
  0x6f   :  { %185 = vsyncpa [#allocation4], 1 }
  0x70   :  { %186 = vsyncpa [#allocation5], 1 }
  0x71   :  { %187 = vsyncpa [#allocation7], 1 }

</bundles_post_ra>
